<compile_context>
chip_gen: v6e
topology: v6e:2x2x1
jax: 0.10.0
libtpu: 0.0.40
codegen_flags: <defaults>
</compile_context>

<pallas_src>
import jax
import jax.numpy as jnp
from jax.experimental import pallas as pl
from jax.experimental.pallas import tpu as pltpu

EMBEDDING_DIM = 100
NUM_CLASSES = 4
_LANE = 128


def _round_up(n, m=_LANE):
    return ((n + m - 1) // m) * m


_VMEM_SPEC = pl.BlockSpec(memory_space=pltpu.MemorySpace.VMEM)


# ------------------------------ fused kernel ------------------------------- #

def _fused_lstm_kernel(idx_ref, emb_ref, w_ref, b_ref, wl_ref, bl_ref, out_ref):
    """Fused embedding-gather + stacked LSTM cells (seq_len==1, h0=c0=0) + Linear.

    idx_ref : [B, 1]      int32  token indices
    emb_ref : [C, P]      f32    zero-padded embedding table (C>=chars_len, P>=100)
    w_ref   : [L, P, 4P]  bf16   per-layer W_ih^T; each gate padded to P lanes,
                                 pad rows/cols are zero
    b_ref   : [L, 1, 4P]  f32    per-layer (b_ih + b_hh), gate-padded with zeros
    wl_ref  : [P, O]      bf16   final Linear W^T, zero-padded
    bl_ref  : [1, O]      f32    final Linear bias, zero-padded
    out_ref : [B, O]      f32    lane-dense output; real logits in [:, :4]
    """
    B = idx_ref.shape[0]
    C = emb_ref.shape[0]
    P = emb_ref.shape[1]
    L = w_ref.shape[0]

    # Embedding gather as a one-hot MXU matmul (exact row selection, no gather op).
    lane = jax.lax.broadcasted_iota(jnp.int32, (B, C), 1)
    one_hot = (lane == idx_ref[...]).astype(jnp.float32)          # [B, C]
    x = jnp.dot(one_hot, emb_ref[...],
                preferred_element_type=jnp.float32)                # [B, P]

    # seq_len == 1 -> one cell step per layer, h_prev = c_prev = 0.
    for l in range(L):                                             # static unroll
        gates = jnp.dot(x.astype(jnp.bfloat16), w_ref[l],
                        preferred_element_type=jnp.float32) + b_ref[l]   # [B, 4P]
        # PyTorch gate order: i, f, g, o.  f multiplies c_prev == 0 -> dead.
        # Each gate block is a whole 128-lane vreg (P == 128k), so these
        # slices are lane-aligned selections, not cross-lane shuffles.
        i = jax.nn.sigmoid(gates[:, 0 * P:1 * P])
        g = jnp.tanh(gates[:, 2 * P:3 * P])
        o = jax.nn.sigmoid(gates[:, 3 * P:4 * P])
        x = o * jnp.tanh(i * g)        # c = i * g; pad lanes stay exactly 0

    # Dropout(0.2) is identity in eval mode; Linear(hidden_dim, 4), lane-dense store.
    # TODO(synk): training-mode dropout RNG intentionally omitted (eval forward).
    out_ref[...] = jnp.dot(x.astype(jnp.bfloat16), wl_ref[...],
                           preferred_element_type=jnp.float32) + bl_ref[...]


# ------------------------------ model wrapper ------------------------------ #

def init_params(key, chars_len, hidden_dim, layer_num):
    """Deterministic synthetic parameters, pre-padded to lane-aligned shapes."""
    assert hidden_dim <= _round_up(hidden_dim)
    P = max(_round_up(EMBEDDING_DIM), _round_up(hidden_dim))   # per-gate / feature pad
    C = _round_up(chars_len)
    O = _round_up(NUM_CLASSES)

    keys = iter(jax.random.split(key, 1 + 3 * layer_num + 2))

    emb = jax.random.normal(next(keys), (chars_len, EMBEDDING_DIM), jnp.float32) * 0.1
    emb_pad = jnp.zeros((C, P), jnp.float32).at[:chars_len, :EMBEDDING_DIM].set(emb)

    scale = 1.0 / float(hidden_dim) ** 0.5
    w_layers, b_layers = [], []
    for layer in range(layer_num):
        d_in = EMBEDDING_DIM if layer == 0 else hidden_dim
        w_ih = jax.random.uniform(next(keys), (4 * hidden_dim, d_in),
                                  jnp.float32, -scale, scale)
        # W_hh multiplies h_prev == 0 (seq_len == 1) -> dead; not materialized.
        b_ih = jax.random.uniform(next(keys), (4 * hidden_dim,),
                                  jnp.float32, -scale, scale)
        b_hh = jax.random.uniform(next(keys), (4 * hidden_dim,),
                                  jnp.float32, -scale, scale)
        b_eff = b_ih + b_hh
        w_t = w_ih.T                                              # [d_in, 4H]
        w_pad = jnp.zeros((P, 4 * P), jnp.float32)
        b_pad = jnp.zeros((4 * P,), jnp.float32)
        for gate in range(4):
            w_pad = w_pad.at[:d_in, gate * P:gate * P + hidden_dim].set(
                w_t[:, gate * hidden_dim:(gate + 1) * hidden_dim])
            b_pad = b_pad.at[gate * P:gate * P + hidden_dim].set(
                b_eff[gate * hidden_dim:(gate + 1) * hidden_dim])
        w_layers.append(w_pad.astype(jnp.bfloat16))
        b_layers.append(b_pad.reshape(1, 4 * P))

    w_lin = jax.random.uniform(next(keys), (NUM_CLASSES, hidden_dim),
                               jnp.float32, -scale, scale)
    b_lin = jax.random.uniform(next(keys), (NUM_CLASSES,),
                               jnp.float32, -scale, scale)
    wl_pad = jnp.zeros((P, O), jnp.float32).at[:hidden_dim, :NUM_CLASSES].set(w_lin.T)
    bl_pad = jnp.zeros((1, O), jnp.float32).at[0, :NUM_CLASSES].set(b_lin)

    return {
        "embedding": emb_pad,                    # [C, P]      f32
        "w_ih_t": jnp.stack(w_layers),           # [L, P, 4P]  bf16
        "b": jnp.stack(b_layers),                # [L, 1, 4P]  f32
        "w_lin_t": wl_pad.astype(jnp.bfloat16),  # [P, O]      bf16
        "b_lin": bl_pad,                         # [1, O]      f32
    }


@jax.jit
def lstm_forward(params, x_idx):
    B = x_idx.shape[0]
    emb, w, b = params["embedding"], params["w_ih_t"], params["b"]
    wl, bl = params["w_lin_t"], params["b_lin"]
    L, P = w.shape[0], w.shape[1]
    C, O = emb.shape[0], wl.shape[1]

    flops = 2 * B * C * P + L * 2 * B * P * (4 * P) + 2 * B * P * O
    transcendentals = L * 4 * B * P
    bytes_accessed = (x_idx.size * 4
                      + emb.size * emb.dtype.itemsize
                      + w.size * w.dtype.itemsize
                      + b.size * b.dtype.itemsize
                      + wl.size * wl.dtype.itemsize
                      + bl.size * bl.dtype.itemsize
                      + B * O * 4)

    out_pad = pl.pallas_call(
        _fused_lstm_kernel,
        out_shape=jax.ShapeDtypeStruct((B, O), jnp.float32),
        in_specs=[_VMEM_SPEC] * 6,
        out_specs=_VMEM_SPEC,
        cost_estimate=pl.CostEstimate(flops=flops,
                                      transcendentals=transcendentals,
                                      bytes_accessed=bytes_accessed),
    )(x_idx.reshape(B, 1).astype(jnp.int32), emb, w, b, wl, bl)

    # x.view(len(x), 1, -1): seq_len == 1 -> final output is [B, 1, 4].
    return out_pad[:, :NUM_CLASSES].reshape(B, 1, NUM_CLASSES)


# --------------------------------- demo ------------------------------------ #

if __name__ == "__main__":
    chars_len, hidden_dim, layer_num = 50, 32, 2
    batch = 8

    key = jax.random.PRNGKey(0)
    pkey, xkey = jax.random.split(key)
    params = init_params(pkey, chars_len, hidden_dim, layer_num)
    x_idx = jax.random.randint(xkey, (batch,), 0, chars_len, dtype=jnp.int32)

    out = lstm_forward(params, x_idx)
    jax.block_until_ready(out)
    assert out.shape == (batch, 1, 4), out.shape
    print("KERNEL_OK")
</pallas_src>

<mosaic_0001>
module attributes {stable_mosaic.version = 11 : i64} {
  func.func @_fused_lstm_kernel(%arg0: memref<8x1xi32, #tpu.memory_space<vmem>>, %arg1: memref<128x128xf32, #tpu.memory_space<vmem>>, %arg2: memref<2x128x512xbf16, #tpu.memory_space<vmem>>, %arg3: memref<2x1x512xf32, #tpu.memory_space<vmem>>, %arg4: memref<128x128xbf16, #tpu.memory_space<vmem>>, %arg5: memref<1x128xf32, #tpu.memory_space<vmem>>, %arg6: memref<8x128xf32, #tpu.memory_space<vmem>>) attributes {dimension_semantics = [], scalar_prefetch = 0 : i64, scratch_operands = 0 : i64, tpu.core_type = #tpu.core_type<tc>} {
    %0 = tpu.iota {dimensions = array<i32: 1>} : vector<8x128xi32>
    %c0 = arith.constant 0 : index
    %c0_0 = arith.constant 0 : index
    %1 = vector.load %arg0[%c0, %c0_0] : memref<8x1xi32, #tpu.memory_space<vmem>>, vector<8x1xi32>
    %2 = vector.broadcast %1 : vector<8x1xi32> to vector<8x128xi32>
    %3 = arith.cmpi eq, %0, %2 : vector<8x128xi32>
    %4 = arith.extui %3 : vector<8x128xi1> to vector<8x128xi32>
    %5 = arith.sitofp %4 : vector<8x128xi32> to vector<8x128xf32>
    %c0_1 = arith.constant 0 : index
    %c0_2 = arith.constant 0 : index
    %6 = vector.load %arg1[%c0_1, %c0_2] : memref<128x128xf32, #tpu.memory_space<vmem>>, vector<128x128xf32>
    %cst = arith.constant dense<0.000000e+00> : vector<8x128xf32>
    %7 = tpu.matmul %5, %6, %cst {dimension_numbers = #tpu.dot_dimension_numbers<[1], [0], [0], [1], [0, 0, 1, 1], [], []>} : vector<8x128xf32>, vector<128x128xf32>, vector<8x128xf32> -> vector<8x128xf32>
    %8 = arith.truncf %7 : vector<8x128xf32> to vector<8x128xbf16>
    %c0_3 = arith.constant 0 : index
    %c0_4 = arith.constant 0 : index
    %c0_5 = arith.constant 0 : index
    %9 = vector.load %arg2[%c0_3, %c0_4, %c0_5] : memref<2x128x512xbf16, #tpu.memory_space<vmem>>, vector<1x128x512xbf16>
    %10 = vector.shape_cast %9 : vector<1x128x512xbf16> to vector<128x512xbf16>
    %cst_6 = arith.constant dense<0.000000e+00> : vector<8x512xf32>
    %11 = tpu.matmul %8, %10, %cst_6 {dimension_numbers = #tpu.dot_dimension_numbers<[1], [0], [0], [1], [0, 0, 1, 1], [], []>} : vector<8x128xbf16>, vector<128x512xbf16>, vector<8x512xf32> -> vector<8x512xf32>
    %c0_7 = arith.constant 0 : index
    %c0_8 = arith.constant 0 : index
    %c0_9 = arith.constant 0 : index
    %12 = vector.load %arg3[%c0_7, %c0_8, %c0_9] : memref<2x1x512xf32, #tpu.memory_space<vmem>>, vector<1x1x512xf32>
    %13 = vector.shape_cast %12 : vector<1x1x512xf32> to vector<1x512xf32>
    %14 = vector.broadcast %13 : vector<1x512xf32> to vector<8x512xf32>
    %15 = arith.addf %11, %14 : vector<8x512xf32>
    %16 = vector.extract_strided_slice %15 {offsets = [0, 0], sizes = [8, 128], strides = [1, 1]} : vector<8x512xf32> to vector<8x128xf32>
    %17 = arith.negf %16 : vector<8x128xf32>
    %18 = math.exp %17 : vector<8x128xf32>
    %cst_10 = arith.constant 1.000000e+00 : f32
    %19 = vector.broadcast %cst_10 : f32 to vector<8x128xf32>
    %20 = arith.addf %19, %18 : vector<8x128xf32>
    %21 = arith.divf %19, %20 : vector<8x128xf32>
    %22 = vector.extract_strided_slice %15 {offsets = [0, 256], sizes = [8, 128], strides = [1, 1]} : vector<8x512xf32> to vector<8x128xf32>
    %23 = math.tanh %22 : vector<8x128xf32>
    %24 = vector.extract_strided_slice %15 {offsets = [0, 384], sizes = [8, 128], strides = [1, 1]} : vector<8x512xf32> to vector<8x128xf32>
    %25 = arith.negf %24 : vector<8x128xf32>
    %26 = math.exp %25 : vector<8x128xf32>
    %cst_11 = arith.constant 1.000000e+00 : f32
    %27 = vector.broadcast %cst_11 : f32 to vector<8x128xf32>
    %28 = arith.addf %27, %26 : vector<8x128xf32>
    %29 = arith.divf %27, %28 : vector<8x128xf32>
    %30 = arith.mulf %21, %23 : vector<8x128xf32>
    %31 = math.tanh %30 : vector<8x128xf32>
    %32 = arith.mulf %29, %31 : vector<8x128xf32>
    %33 = arith.truncf %32 : vector<8x128xf32> to vector<8x128xbf16>
    %c1 = arith.constant 1 : index
    %c0_12 = arith.constant 0 : index
    %c0_13 = arith.constant 0 : index
    %34 = vector.load %arg2[%c1, %c0_12, %c0_13] : memref<2x128x512xbf16, #tpu.memory_space<vmem>>, vector<1x128x512xbf16>
    %35 = vector.shape_cast %34 : vector<1x128x512xbf16> to vector<128x512xbf16>
    %cst_14 = arith.constant dense<0.000000e+00> : vector<8x512xf32>
    %36 = tpu.matmul %33, %35, %cst_14 {dimension_numbers = #tpu.dot_dimension_numbers<[1], [0], [0], [1], [0, 0, 1, 1], [], []>} : vector<8x128xbf16>, vector<128x512xbf16>, vector<8x512xf32> -> vector<8x512xf32>
    %c1_15 = arith.constant 1 : index
    %c0_16 = arith.constant 0 : index
    %c0_17 = arith.constant 0 : index
    %37 = vector.load %arg3[%c1_15, %c0_16, %c0_17] : memref<2x1x512xf32, #tpu.memory_space<vmem>>, vector<1x1x512xf32>
    %38 = vector.shape_cast %37 : vector<1x1x512xf32> to vector<1x512xf32>
    %39 = vector.broadcast %38 : vector<1x512xf32> to vector<8x512xf32>
    %40 = arith.addf %36, %39 : vector<8x512xf32>
    %41 = vector.extract_strided_slice %40 {offsets = [0, 0], sizes = [8, 128], strides = [1, 1]} : vector<8x512xf32> to vector<8x128xf32>
    %42 = arith.negf %41 : vector<8x128xf32>
    %43 = math.exp %42 : vector<8x128xf32>
    %cst_18 = arith.constant 1.000000e+00 : f32
    %44 = vector.broadcast %cst_18 : f32 to vector<8x128xf32>
    %45 = arith.addf %44, %43 : vector<8x128xf32>
    %46 = arith.divf %44, %45 : vector<8x128xf32>
    %47 = vector.extract_strided_slice %40 {offsets = [0, 256], sizes = [8, 128], strides = [1, 1]} : vector<8x512xf32> to vector<8x128xf32>
    %48 = math.tanh %47 : vector<8x128xf32>
    %49 = vector.extract_strided_slice %40 {offsets = [0, 384], sizes = [8, 128], strides = [1, 1]} : vector<8x512xf32> to vector<8x128xf32>
    %50 = arith.negf %49 : vector<8x128xf32>
    %51 = math.exp %50 : vector<8x128xf32>
    %cst_19 = arith.constant 1.000000e+00 : f32
    %52 = vector.broadcast %cst_19 : f32 to vector<8x128xf32>
    %53 = arith.addf %52, %51 : vector<8x128xf32>
    %54 = arith.divf %52, %53 : vector<8x128xf32>
    %55 = arith.mulf %46, %48 : vector<8x128xf32>
    %56 = math.tanh %55 : vector<8x128xf32>
    %57 = arith.mulf %54, %56 : vector<8x128xf32>
    %58 = arith.truncf %57 : vector<8x128xf32> to vector<8x128xbf16>
    %c0_20 = arith.constant 0 : index
    %c0_21 = arith.constant 0 : index
    %59 = vector.load %arg4[%c0_20, %c0_21] : memref<128x128xbf16, #tpu.memory_space<vmem>>, vector<128x128xbf16>
    %cst_22 = arith.constant dense<0.000000e+00> : vector<8x128xf32>
    %60 = tpu.matmul %58, %59, %cst_22 {dimension_numbers = #tpu.dot_dimension_numbers<[1], [0], [0], [1], [0, 0, 1, 1], [], []>} : vector<8x128xbf16>, vector<128x128xbf16>, vector<8x128xf32> -> vector<8x128xf32>
    %c0_23 = arith.constant 0 : index
    %c0_24 = arith.constant 0 : index
    %61 = vector.load %arg5[%c0_23, %c0_24] : memref<1x128xf32, #tpu.memory_space<vmem>>, vector<1x128xf32>
    %62 = vector.broadcast %61 : vector<1x128xf32> to vector<8x128xf32>
    %63 = arith.addf %60, %62 : vector<8x128xf32>
    %c0_25 = arith.constant 0 : index
    %c0_26 = arith.constant 0 : index
    %64 = vector.load %arg6[%c0_25, %c0_26] : memref<8x128xf32, #tpu.memory_space<vmem>>, vector<8x128xf32>
    tpu.vector_store %arg6[%c0_25, %c0_26], %63 {strides = array<i32>} : memref<8x128xf32, #tpu.memory_space<vmem>>, vector<8x128xf32>,
    return
  }
}

</mosaic_0001>

<bundles_post_ra>
// kernel: lstm_forward.1
= control target key start
LH: loop header
LB: loop body
LE: loop exit
PB: predicated region body
PF: predicated region fallthrough
CT: control target
= control target key end

     0   :  { %11 = vsyncpa [#allocation3], 0  ;;  %s1382_s0 = inlined_call_operand.vmem [shape: s32[8,1], index: 0, kind: input, shape index: {}]   ;;  %s1383_s1 = inlined_call_operand.hbm [shape: f32[128,128], index: 1, kind: input, shape index: {}]   ;;  %s1384_s2 = inlined_call_operand.hbm [shape: bf16[2,128,512], index: 2, kind: input, shape index: {}]   ;;  %s1385_s3 = inlined_call_operand.vmem [shape: f32[2,1,512], index: 3, kind: input, shape index: {}]   ;;  %s1386_s4 = inlined_call_operand.hbm [shape: bf16[128,128], index: 4, kind: input, shape index: {}]   ;;  %s1387_s5 = inlined_call_operand.vmem [shape: f32[1,128], index: 5, kind: input, shape index: {}]   ;;  %s1388_s6 = inlined_call_operand.vmem [shape: f32[8,128], index: 6, kind: output, shape index: {}]  }
   0x1   :  { %12 = vsyncpa [#allocation5], 0  ;;  %s1262_s21 = smov [#allocation4]  }
   0x2   :  { %s32_s22 = sshll.u32 %s1262_s21, 4  ;;  %s33_s22 = int_to_ptr.vmem [resolvable:$true] %s32_s22 }
   0x3   :  { %s1206_s23 = scalar_lea.vmem %s33_s22, 8192  ;;  %p1211_p1 = scmp.lt.s32.totalorder %s33_s22, %s33_s22 }
   0x4   :  { %p1207_p0 = scmp.ne.s32.totalorder %s33_s22, %s1206_s23  ;;  %p1212_p2 = scmp.lt.s32.totalorder %s1206_s23, %s1206_s23 }
   0x6   :  { %p1213_p3 = por %p1212_p2, %p1211_p1 }
   0x8   :  { %p1214_p4 = pnand %p1213_p3, %p1207_p0 }
   0xa   :  { %1217 = shalt.err (!%p1214_p4)
}
   0xb   :  { %s1263_s24 = smov 256   ;;  %s1264_s25 = smov 16  }
   0xc   :  { %38 = dma.hbm_to_vmem [thread:$0]  %s1384_s2, 8192, %s33_s22, [#allocation5], %s1263_s24, %s1263_s24, %s1264_s25  }
   0xd   :  { %s1265_s28 = smov [#allocation2]  }
   0xe   :  { %s20_s29 = sshll.u32 %s1265_s28, 4  ;;  %s21_s29 = int_to_ptr.vmem [resolvable:$true] %s20_s29 }
   0xf   :  { %s1226_s30 = scalar_lea.vmem %s21_s29, 2048  ;;  %p1231_p6 = scmp.lt.s32.totalorder %s21_s29, %s21_s29 }
  0x10   :  { %p1227_p5 = scmp.ne.s32.totalorder %s21_s29, %s1226_s30  ;;  %p1232_p7 = scmp.lt.s32.totalorder %s1226_s30, %s1226_s30 }
  0x12   :  { %p1233_p8 = por %p1232_p7, %p1231_p6 }
  0x14   :  { %p1234_p9 = pnand %p1233_p8, %p1227_p5 }
  0x16   :  { %1237 = shalt.err (!%p1234_p9)
}
  0x17   :  { %s1266_s7 = smov 128   ;;  %s1267_s8 = smov 8  }
  0x18   :  { %26 = dma.hbm_to_vmem [thread:$0]  %s1383_s1, 2048, %s21_s29, [#allocation3], %s1266_s7, %s1266_s7, %s1267_s8  }
  0x19   :  { %s1268_s11 = smov [#allocation6]  }
  0x1a   :  { %s46_s12 = sshll.u32 %s1268_s11, 4  ;;  %s47_s12 = int_to_ptr.vmem [resolvable:$true] %s46_s12 }
  0x1b   :  { %s1246_s2 = scalar_lea.vmem %s47_s12, 1024  ;;  %p1251_p11 = scmp.lt.s32.totalorder %s47_s12, %s47_s12 }
  0x1c   :  { %p1247_p10 = scmp.ne.s32.totalorder %s47_s12, %s1246_s2  ;;  %p1252_p12 = scmp.lt.s32.totalorder %s1246_s2, %s1246_s2 }
  0x1e   :  { %p1253_p13 = por %p1252_p12, %p1251_p11 }
  0x20   :  { %p1254_p0 = pnand %p1253_p13, %p1247_p10 }
  0x22   :  { %1257 = shalt.err (!%p1254_p0)
}
  0x23   :  { %s1269_s13 = smov 64   ;;  %s1270_s14 = smov 4  }
  0x24   :  { %52 = dma.hbm_to_vmem [thread:$0]  %s1386_s4, 1024, %s47_s12, [#allocation5], %s1269_s13, %s1269_s13, %s1270_s14  }
  0x25   :  { %1258 = dma.done.wait [#allocation3], 2048  }
  0x26   :  { %1259 = vsyncadd [#allocation3], 4294965248 }
  0x27   :  { %1260 = dma.done.wait [#allocation5], 9216  }
  0x28   :  { %1261 = vsyncadd [#allocation5], 4294958080  ;;  %v1271_v0 = vmov 0   ;;  %v1272_v1 = vmov 0.0   ;;  %vm1273_vm0 = vmmov 0   ;;  %v67_v2 = vld [vmem:[%s1382_s0] sm:$0xff]  ;;  %v65_v35 = vlaneseq }
  0x29   :  { %1069 = vset.pattern.permute.xlu0 %v1271_v0  ;;  %1001 = vmatprep.subr.mxu0 %v1272_v1  ;;  %v89_v3 = vld [vmem:[#allocation2 + $0x78] sm:$0xff]  ;;  %v88_v4 = vld [vmem:[#allocation2 + $0x70] sm:$0xff]  ;;  %v87_v5 = vld [vmem:[#allocation2 + $0x68] sm:$0xff]  ;;  %v1274_v40 = vmov 1.0  }
  0x2a   :  { %402 = vmatprep.mubr.bf16.mxu1 %v1271_v0  ;;  %1033 = vmatprep.mubr.msk.f32.mxu0 %vm1273_vm0, %v1272_v1  ;;  %v86_v6 = vld [vmem:[#allocation2 + $0x60] sm:$0xff]  ;;  %v85_v7 = vld [vmem:[#allocation2 + $0x58] sm:$0xff]  ;;  %v84_v9 = vld [vmem:[#allocation2 + $0x50] sm:$0xff]  ;;  %v66_v36 = vand.u32 127, %v65_v35 }
  0x2b   :  { %69 = vperm.xlu0 %1069, %v67_v2   ;;  %1002 = vmatpush3.msra.mxu0 %v89_v3  ;;  %v1070_v8 = vld [vmem:[#allocation4 + $0xe4] ss:$16 sps:$4 sm:$0xff]   ;;  %v1075_v10 = vld [vmem:[#allocation4 + $0xe0] ss:$16 sps:$4 sm:$0xff]   ;;  %v83_v12 = vld [vmem:[#allocation2 + $0x48] sm:$0xff] }
  0x2c   :  { %1003 = vmatprep.subr.mxu0 %v1272_v1  ;;  %370 = vmatprep.subr.bf16.mxu1 %v1070_v8  ;;  %v1076_v11 = vld [vmem:[#allocation4 + $0xc4] ss:$16 sps:$4 sm:$0xff]   ;;  %v1081_v13 = vld [vmem:[#allocation4 + $0xc0] ss:$16 sps:$4 sm:$0xff]   ;;  %v81_v16 = vld [vmem:[#allocation2 + $0x38] sm:$0xff] }
  0x2d   :  { %1004 = vmatpush3.msra.mxu0 %v88_v4  ;;  %371 = vmatpush1.bf16.msra.mxu1 %v1075_v10  ;;  %v1082_v14 = vld [vmem:[#allocation4 + $0xa4] ss:$16 sps:$4 sm:$0xff]   ;;  %v1087_v17 = vld [vmem:[#allocation4 + $0xa0] ss:$16 sps:$4 sm:$0xff]   ;;  %v79_v20 = vld [vmem:[#allocation2 + $0x28] sm:$0xff] }
  0x2e   :  { %1005 = vmatprep.subr.mxu0 %v1272_v1  ;;  %372 = vmatprep.subr.bf16.mxu1 %v1076_v11  ;;  %v82_v15 = vld [vmem:[#allocation2 + $0x40] sm:$0xff]  ;;  %v80_v19 = vld [vmem:[#allocation2 + $0x30] sm:$0xff]  ;;  %v77_v24 = vld [vmem:[#allocation2 + $0x18] sm:$0xff] }
  0x2f   :  { %1006 = vmatpush3.msra.mxu0 %v87_v5  ;;  %v1088_v18 = vld [vmem:[#allocation4 + $0x84] ss:$16 sps:$4 sm:$0xff]   ;;  %v1093_v21 = vld [vmem:[#allocation4 + $0x80] ss:$16 sps:$4 sm:$0xff]   ;;  %v75_v28 = vld [vmem:[#allocation2 + $0x8] sm:$0xff] }
  0x30   :  { %1007 = vmatprep.subr.mxu0 %v1272_v1  ;;  %v1094_v22 = vld [vmem:[#allocation4 + $0x64] ss:$16 sps:$4 sm:$0xff]   ;;  %v1099_v25 = vld [vmem:[#allocation4 + $0x60] ss:$16 sps:$4 sm:$0xff]   ;;  %v1074_v30 = vld [vmem:[#allocation4 + $0xec] ss:$16 sps:$4 sm:$0xff]  }
  0x31   :  { %1008 = vmatpush3.msra.mxu0 %v86_v6  ;;  %373 = vmatpush1.bf16.msra.mxu1 %v1081_v13  ;;  %v78_v23 = vld [vmem:[#allocation2 + $0x20] sm:$0xff]  ;;  %v76_v27 = vld [vmem:[#allocation2 + $0x10] sm:$0xff]  ;;  %v1072_v37 = vld [vmem:[#allocation4 + $0xe8] ss:$16 sps:$4 sm:$0xff]  }
  0x32   :  { %1009 = vmatprep.subr.mxu0 %v1272_v1  ;;  %374 = vmatprep.subr.bf16.mxu1 %v1082_v14  ;;  %v1100_v26 = vld [vmem:[#allocation4 + $0x44] ss:$16 sps:$4 sm:$0xff]   ;;  %v1105_v31 = vld [vmem:[#allocation4 + $0x40] ss:$16 sps:$4 sm:$0xff]   ;;  %v1080_v39 = vld [vmem:[#allocation4 + $0xcc] ss:$16 sps:$4 sm:$0xff]  }
  0x33   :  { %1010 = vmatpush3.msra.mxu0 %v85_v7  ;;  %v74_v29 = vld [vmem:[#allocation2] sm:$0xff]  ;;  %v1078_v41 = vld [vmem:[#allocation4 + $0xc8] ss:$16 sps:$4 sm:$0xff]   ;;  %v1086_v42 = vld [vmem:[#allocation4 + $0xac] ss:$16 sps:$4 sm:$0xff]  }
  0x34   :  { %1011 = vmatprep.subr.mxu0 %v1272_v1  ;;  %v1106_v32 = vld [vmem:[#allocation4 + $0x24] ss:$16 sps:$4 sm:$0xff]   ;;  %v1111_v33 = vld [vmem:[#allocation4 + $0x20] ss:$16 sps:$4 sm:$0xff]   ;;  %v1084_v43 = vld [vmem:[#allocation4 + $0xa8] ss:$16 sps:$4 sm:$0xff]  }
  0x35   :  { %1012 = vmatpush3.msra.mxu0 %v84_v9  ;;  %375 = vmatpush1.bf16.msra.mxu1 %v1087_v17  ;;  %v1112_v34 = vld [vmem:[#allocation4 + $0x4] ss:$16 sps:$4 sm:$0xff]   ;;  %v1092_v44 = vld [vmem:[#allocation4 + $0x8c] ss:$16 sps:$4 sm:$0xff]   ;;  %v1090_v45 = vld [vmem:[#allocation4 + $0x88] ss:$16 sps:$4 sm:$0xff]  }
  0x36   :  { %1013 = vmatprep.subr.mxu0 %v1272_v1  ;;  %376 = vmatprep.subr.bf16.mxu1 %v1088_v18  ;;  %v1098_v46 = vld [vmem:[#allocation4 + $0x6c] ss:$16 sps:$4 sm:$0xff]   ;;  %v1096_v47 = vld [vmem:[#allocation4 + $0x68] ss:$16 sps:$4 sm:$0xff]   ;;  %v1117_v54 = vld [vmem:[#allocation4] ss:$16 sps:$4 sm:$0xff]  }
  0x37   :  { %1014 = vmatpush3.msra.mxu0 %v83_v12  ;;  %v1104_v48 = vld [vmem:[#allocation4 + $0x4c] ss:$16 sps:$4 sm:$0xff]   ;;  %v1102_v49 = vld [vmem:[#allocation4 + $0x48] ss:$16 sps:$4 sm:$0xff]   ;;  %v1120_v58 = vld [vmem:[#allocation4 + $0x1e4] ss:$16 sps:$4 sm:$0xff]  }
  0x38   :  { %1015 = vmatprep.subr.mxu0 %v1272_v1  ;;  %v1110_v50 = vld [vmem:[#allocation4 + $0x2c] ss:$16 sps:$4 sm:$0xff]   ;;  %v1108_v51 = vld [vmem:[#allocation4 + $0x28] ss:$16 sps:$4 sm:$0xff]   ;;  %v1118_v60 = vld [vmem:[#allocation4 + $0x1e0] ss:$16 sps:$4 sm:$0xff]  }
  0x39   :  { %1016 = vmatpush3.msra.mxu0 %v82_v15  ;;  %377 = vmatpush1.bf16.msra.mxu1 %v1093_v21  ;;  %v1116_v52 = vld [vmem:[#allocation4 + $0xc] ss:$16 sps:$4 sm:$0xff]   ;;  %v1114_v53 = vld [vmem:[#allocation4 + $0x8] ss:$16 sps:$4 sm:$0xff]   ;;  %v1126_v62 = vld [vmem:[#allocation4 + $0x1c4] ss:$16 sps:$4 sm:$0xff]  }
  0x3a   :  { %1017 = vmatprep.subr.mxu0 %v1272_v1  ;;  %378 = vmatprep.subr.bf16.mxu1 %v1094_v22  ;;  %v1123_v59 = vld [vmem:[#allocation4 + $0x1ec] ss:$16 sps:$4 sm:$0xff]   ;;  %v1121_v61 = vld [vmem:[#allocation4 + $0x1e8] ss:$16 sps:$4 sm:$0xff]   ;;  %v1124_v2 = vld [vmem:[#allocation4 + $0x1c0] ss:$16 sps:$4 sm:$0xff]  }
  0x3b   :  { %1018 = vmatpush3.msra.mxu0 %v81_v16  ;;  %v1129_v63 = vld [vmem:[#allocation4 + $0x1cc] ss:$16 sps:$4 sm:$0xff]   ;;  %v1127_v3 = vld [vmem:[#allocation4 + $0x1c8] ss:$16 sps:$4 sm:$0xff]   ;;  %v1132_v4 = vld [vmem:[#allocation4 + $0x1a4] ss:$16 sps:$4 sm:$0xff]  }
  0x3c   :  { %1019 = vmatprep.subr.mxu0 %v1272_v1  ;;  %v1135_v5 = vld [vmem:[#allocation4 + $0x1ac] ss:$16 sps:$4 sm:$0xff]   ;;  %v1130_v6 = vld [vmem:[#allocation4 + $0x1a0] ss:$16 sps:$4 sm:$0xff]   ;;  %v1138_v7 = vld [vmem:[#allocation4 + $0x184] ss:$16 sps:$4 sm:$0xff]  }
  0x3d   :  { %1020 = vmatpush3.msra.mxu0 %v80_v19  ;;  %379 = vmatpush1.bf16.msra.mxu1 %v1099_v25  ;;  %v1141_v8 = vld [vmem:[#allocation4 + $0x18c] ss:$16 sps:$4 sm:$0xff]   ;;  %v1136_v9 = vld [vmem:[#allocation4 + $0x180] ss:$16 sps:$4 sm:$0xff]   ;;  %v1139_v10 = vld [vmem:[#allocation4 + $0x188] ss:$16 sps:$4 sm:$0xff]  }
  0x3e   :  { %1021 = vmatprep.subr.mxu0 %v1272_v1  ;;  %380 = vmatprep.subr.bf16.mxu1 %v1100_v26  ;;  %v1142_v11 = vld [vmem:[#allocation4 + $0x160] ss:$16 sps:$4 sm:$0xff]   ;;  %v1144_v12 = vld [vmem:[#allocation4 + $0x164] ss:$16 sps:$4 sm:$0xff]   ;;  %v1145_v13 = vld [vmem:[#allocation4 + $0x168] ss:$16 sps:$4 sm:$0xff]  }
  0x3f   :  { %1022 = vmatpush3.msra.mxu0 %v79_v20  ;;  %v1147_v14 = vld [vmem:[#allocation4 + $0x16c] ss:$16 sps:$4 sm:$0xff]   ;;  %v1150_v15 = vld [vmem:[#allocation4 + $0x144] ss:$16 sps:$4 sm:$0xff]   ;;  %v1148_v17 = vld [vmem:[#allocation4 + $0x140] ss:$16 sps:$4 sm:$0xff]  }
  0x40   :  { %1023 = vmatprep.subr.mxu0 %v1272_v1  ;;  %v1153_v16 = vld [vmem:[#allocation4 + $0x14c] ss:$16 sps:$4 sm:$0xff]   ;;  %v1151_v18 = vld [vmem:[#allocation4 + $0x148] ss:$16 sps:$4 sm:$0xff]   ;;  %v1156_v19 = vld [vmem:[#allocation4 + $0x124] ss:$16 sps:$4 sm:$0xff]  }
  0x41   :  { %1024 = vmatpush3.msra.mxu0 %v78_v23  ;;  %381 = vmatpush1.bf16.msra.mxu1 %v1105_v31  ;;  %v1159_v20 = vld [vmem:[#allocation4 + $0x12c] ss:$16 sps:$4 sm:$0xff]   ;;  %v1154_v21 = vld [vmem:[#allocation4 + $0x120] ss:$16 sps:$4 sm:$0xff]   ;;  %v1157_v22 = vld [vmem:[#allocation4 + $0x128] ss:$16 sps:$4 sm:$0xff]  }
  0x42   :  { %1025 = vmatprep.subr.mxu0 %v1272_v1  ;;  %382 = vmatprep.subr.bf16.mxu1 %v1106_v32  ;;  %v1162_v23 = vld [vmem:[#allocation4 + $0x104] ss:$16 sps:$4 sm:$0xff]   ;;  %v1160_v25 = vld [vmem:[#allocation4 + $0x100] ss:$16 sps:$4 sm:$0xff]   ;;  %v1163_v26 = vld [vmem:[#allocation4 + $0x108] ss:$16 sps:$4 sm:$0xff]  }
  0x43   :  { %1026 = vmatpush3.msra.mxu0 %v77_v24  ;;  %v1165_v24 = vld [vmem:[#allocation4 + $0x10c] ss:$16 sps:$4 sm:$0xff]  }
  0x44   :  { %1027 = vmatprep.subr.mxu0 %v1272_v1 }
  0x45   :  { %1028 = vmatpush3.msra.mxu0 %v76_v27  ;;  %383 = vmatpush1.bf16.msra.mxu1 %v1111_v33  ;;  %v1348_v27 = vshrl.u32 %v65_v35, 7 }
  0x46   :  { %1029 = vmatprep.subr.mxu0 %v1272_v1  ;;  %384 = vmatprep.subr.bf16.mxu1 %v1112_v34 }
  0x47   :  { %1030 = vmatpush3.msra.mxu0 %v75_v28  ;;  %v197_v28 = vsub.s32 0, %v1348_v27  ;;  %v205_v33 = vsub.s32 3, %v1348_v27 }
  0x48   :  { %1031 = vmatprep.subr.mxu0 %v1272_v1 }
  0x49   :  { %1032 = vmatpush3.msra.mxu0 %v74_v29  ;;  %385 = vmatpush1.bf16.msra.mxu1 %v1117_v54  ;;  %v193_v29 = vld [vmem:[%s1385_s3] sm:$0xf] }
  0x4a   :  { %410 = vmatprep.subr.bf16.mxu0 %v1074_v30  ;;  %679 = vmatprep.subr.bf16.mxu1 %v1120_v58  ;;  %v198_v30 = vrot.slane %v193_v29, %v197_v28  ;;  %v206_v35 = vrot.slane %v193_v29, %v205_v33 }
  0xa6   :  { %v70_v38 = vpop.permute.xlu0 %69 }
  0xa7   :  { %vm71_vm1 = vcmp.eq.s32.totalorder %v66_v36, %v70_v38 }
  0xa8   :  { %1034 = vmatmul.mubr.msk.f32.vlgmr.msra.gmra.mxu0 %vm71_vm1, %v1274_v40 }
  0xa9   :  { %411 = vmatpush1.bf16.msra.mxu0 %v1072_v37  ;;  %442 = vmatprep.mubr.bf16.mxu0 %v1271_v0 }
  0xaa   :  { %412 = vmatprep.subr.bf16.mxu0 %v1080_v39 }
  0xad   :  { %413 = vmatpush1.bf16.msra.mxu0 %v1078_v41 }
  0xae   :  { %414 = vmatprep.subr.bf16.mxu0 %v1086_v42 }
  0xb1   :  { %415 = vmatpush1.bf16.msra.mxu0 %v1084_v43  ;;  %v201_v43 = vsub.s32 2, %v1348_v27 }
  0xb2   :  { %416 = vmatprep.subr.bf16.mxu0 %v1092_v44 }
  0xb5   :  { %417 = vmatpush1.bf16.msra.mxu0 %v1090_v45  ;;  %v202_v45 = vrot.slane %v193_v29, %v201_v43 }
  0xb6   :  { %418 = vmatprep.subr.bf16.mxu0 %v1098_v46 }
  0xb9   :  { %419 = vmatpush1.bf16.msra.mxu0 %v1096_v47 }
  0xba   :  { %420 = vmatprep.subr.bf16.mxu0 %v1104_v48 }
  0xbd   :  { %421 = vmatpush1.bf16.msra.mxu0 %v1102_v49 }
  0xbe   :  { %422 = vmatprep.subr.bf16.mxu0 %v1110_v50 }
  0xc1   :  { %423 = vmatpush1.bf16.msra.mxu0 %v1108_v51 }
  0xc2   :  { %424 = vmatprep.subr.bf16.mxu0 %v1116_v52 }
  0xc5   :  { %425 = vmatpush1.bf16.msra.mxu0 %v1114_v53 }
  0xc6   :  { %719 = vmatprep.subr.bf16.mxu0 %v1123_v59  ;;  %v1166_v59 = vld [vmem:[#allocation6 + $0x38] sm:$0xff]  }
 0x168   :  { %v156_v55 = vpop.f32.mrf.mxu0 }
 0x169   :  { %v160_v56 = vpack.c.bf16 %v156_v55, %v156_v55 }
 0x16a   :  { %v1035_v57 = vpop.f32.mrf.mxu0 }
 0x16b   :  { %403 = vmatmul.mubr.bf16.vlgmr.msra.gmra.mxu1 %v160_v56  ;;  %443 = vmatmul.mubr.bf16.vlgmr.msra.gmra.mxu0 %v160_v56 }
 0x16c   :  { %711 = vmatprep.mubr.bf16.mxu1 %v1271_v0  ;;  %751 = vmatprep.mubr.bf16.mxu0 %v1271_v0  ;;  %v1133_v0 = vld [vmem:[#allocation4 + $0x1a8] ss:$16 sps:$4 sm:$0xff]  }
 0x16d   :  { %680 = vmatpush1.bf16.msra.mxu1 %v1118_v60  ;;  %720 = vmatpush1.bf16.msra.mxu0 %v1121_v61  ;;  %v1167_v60 = vld [vmem:[#allocation6 + $0x30] sm:$0xff]   ;;  %v1168_v61 = vld [vmem:[#allocation6 + $0x28] sm:$0xff]  }
 0x16e   :  { %681 = vmatprep.subr.bf16.mxu1 %v1126_v62  ;;  %721 = vmatprep.subr.bf16.mxu0 %v1129_v63  ;;  %v1169_v62 = vld [vmem:[#allocation6 + $0x20] sm:$0xff]   ;;  %v1170_v63 = vld [vmem:[#allocation6 + $0x18] sm:$0xff]  }
 0x171   :  { %682 = vmatpush1.bf16.msra.mxu1 %v1124_v2  ;;  %722 = vmatpush1.bf16.msra.mxu0 %v1127_v3  ;;  %v1171_v2 = vld [vmem:[#allocation6 + $0x10] sm:$0xff]   ;;  %v1172_v3 = vld [vmem:[#allocation6 + $0x8] sm:$0xff]  }
 0x172   :  { %683 = vmatprep.subr.bf16.mxu1 %v1132_v4  ;;  %723 = vmatprep.subr.bf16.mxu0 %v1135_v5  ;;  %v1173_v4 = vld [vmem:[#allocation6] sm:$0xff]  }
 0x173   :  { %v931_v5 = vld [vmem:[%s1385_s3 + $0x4] sm:$0xf] }
 0x175   :  { %684 = vmatpush1.bf16.msra.mxu1 %v1130_v6  ;;  %724 = vmatpush1.bf16.msra.mxu0 %v1133_v0  ;;  %v507_v6 = vrot.slane %v931_v5, %v197_v28 }
 0x176   :  { %685 = vmatprep.subr.bf16.mxu1 %v1138_v7  ;;  %725 = vmatprep.subr.bf16.mxu0 %v1141_v8 }
 0x179   :  { %686 = vmatpush1.bf16.msra.mxu1 %v1136_v9  ;;  %726 = vmatpush1.bf16.msra.mxu0 %v1139_v10 }
 0x17a   :  { %687 = vmatprep.subr.bf16.mxu1 %v1144_v12  ;;  %727 = vmatprep.subr.bf16.mxu0 %v1147_v14  ;;  %v515_v12 = vrot.slane %v931_v5, %v205_v33 }
 0x17d   :  { %688 = vmatpush1.bf16.msra.mxu1 %v1142_v11  ;;  %728 = vmatpush1.bf16.msra.mxu0 %v1145_v13 }
 0x17e   :  { %689 = vmatprep.subr.bf16.mxu1 %v1150_v15  ;;  %729 = vmatprep.subr.bf16.mxu0 %v1153_v16 }
 0x181   :  { %690 = vmatpush1.bf16.msra.mxu1 %v1148_v17  ;;  %730 = vmatpush1.bf16.msra.mxu0 %v1151_v18  ;;  %v511_v17 = vrot.slane %v931_v5, %v201_v43 }
 0x182   :  { %691 = vmatprep.subr.bf16.mxu1 %v1156_v19  ;;  %731 = vmatprep.subr.bf16.mxu0 %v1159_v20 }
 0x185   :  { %692 = vmatpush1.bf16.msra.mxu1 %v1154_v21  ;;  %732 = vmatpush1.bf16.msra.mxu0 %v1157_v22 }
 0x186   :  { %693 = vmatprep.subr.bf16.mxu1 %v1162_v23  ;;  %733 = vmatprep.subr.bf16.mxu0 %v1165_v24 }
 0x189   :  { %694 = vmatpush1.bf16.msra.mxu1 %v1160_v25  ;;  %734 = vmatpush1.bf16.msra.mxu0 %v1163_v26 }
 0x18a   :  { %1036 = vmatprep.subr.bf16.mxu1 %v1272_v1 }
 0x22b   :  { %v404_v31 = vpop.f32.mrf.mxu1  ;;  %v444_v32 = vpop.f32.mrf.mxu0 }
 0x22c   :  { %v405_v34 = vadd.f32 %v404_v31, %v198_v30  ;;  %v445_v47 = vadd.f32 %v444_v32, %v202_v45  ;;  %v966_v31 = vld [vmem:[%s1387_s5] ss:$0 sm:$0xff] }
 0x22d   :  { %v406_v36 = vpop.f32.mrf.mxu1  ;;  %v446_v37 = vpop.f32.mrf.mxu0 }
 0x22e   :  { %v929_v38 = vmul.f32 -1.442695, %v405_v34  ;;  %v447_v44 = vadd.f32 %v446_v37, %v206_v35 }
 0x22f   :  { %v407_v39 = vpop.f32.mrf.mxu1  ;;  %v448_v40 = vpop.f32.mrf.mxu0 }
 0x230   :  { %1174 = vpow2.f32 %v929_v38  ;;  %v930_v46 = vmul.f32 -1.442695, %v447_v44 }
 0x231   :  { %v408_v41 = vpop.f32.mrf.mxu1  ;;  %v449_v42 = vpop.f32.mrf.mxu0 }
 0x232   :  { %1176 = vpow2.f32 %v930_v46 }
 0x233   :  { %1178 = vtanh.f32 %v445_v47 }
 0x23d   :  { %v1175_v48 = vpop.eup %1174 }
 0x23e   :  { %v454_v49 = vadd.f32 1.0, %v1175_v48 }
 0x23f   :  { %v1177_v50 = vpop.eup %1176 }
 0x240   :  { %1180 = vrcp.f32 %v454_v49  ;;  %v461_v51 = vadd.f32 1.0, %v1177_v50  ;;  %v1179_v52 = vpop.eup %1178 }
 0x242   :  { %1182 = vrcp.f32 %v461_v51 }
 0x24d   :  { %v1181_v53 = vpop.eup %1180 }
 0x24e   :  { %v464_v54 = vmul.f32 %v1181_v53, %v1179_v52 }
 0x24f   :  { %v1183_v55 = vpop.eup %1182 }
 0x250   :  { %1184 = vtanh.f32 %v464_v54 }
 0x25d   :  { %v1185_v56 = vpop.eup %1184 }
 0x25e   :  { %v466_v57 = vmul.f32 %v1185_v56, %v1183_v55 }
 0x260   :  { %v467_v58 = vpack.c.bf16 %v466_v57, %v466_v57 }
 0x262   :  { %712 = vmatmul.mubr.bf16.vlgmr.msra.gmra.mxu1 %v467_v58  ;;  %752 = vmatmul.mubr.bf16.vlgmr.msra.gmra.mxu0 %v467_v58 }
 0x263   :  { %1052 = vmatprep.mubr.msk.bf16.mxu1 %vm1273_vm0, %v1272_v1  ;;  %1037 = vmatpush3.bf16.msra.mxu1 %v1166_v59 }
 0x264   :  { %1038 = vmatprep.subr.bf16.mxu1 %v1272_v1 }
 0x267   :  { %1039 = vmatpush3.bf16.msra.mxu1 %v1167_v60 }
 0x268   :  { %1040 = vmatprep.subr.bf16.mxu1 %v1272_v1 }
 0x26b   :  { %1041 = vmatpush3.bf16.msra.mxu1 %v1168_v61 }
 0x26c   :  { %1042 = vmatprep.subr.bf16.mxu1 %v1272_v1 }
 0x26f   :  { %1043 = vmatpush3.bf16.msra.mxu1 %v1169_v62 }
 0x270   :  { %1044 = vmatprep.subr.bf16.mxu1 %v1272_v1 }
 0x273   :  { %1045 = vmatpush3.bf16.msra.mxu1 %v1170_v63 }
 0x274   :  { %1046 = vmatprep.subr.bf16.mxu1 %v1272_v1 }
 0x277   :  { %1047 = vmatpush3.bf16.msra.mxu1 %v1171_v2 }
 0x278   :  { %1048 = vmatprep.subr.bf16.mxu1 %v1272_v1 }
 0x27b   :  { %1049 = vmatpush3.bf16.msra.mxu1 %v1172_v3 }
 0x27c   :  { %1050 = vmatprep.subr.bf16.mxu1 %v1272_v1 }
 0x27f   :  { %1051 = vmatpush3.bf16.msra.mxu1 %v1173_v4 }
 0x322   :  { %v713_v0 = vpop.f32.mrf.mxu1  ;;  %v753_v7 = vpop.f32.mrf.mxu0 }
 0x323   :  { %v714_v8 = vadd.f32 %v713_v0, %v507_v6  ;;  %v754_v19 = vadd.f32 %v753_v7, %v511_v17 }
 0x324   :  { %v715_v9 = vpop.f32.mrf.mxu1  ;;  %v755_v10 = vpop.f32.mrf.mxu0 }
 0x325   :  { %v964_v11 = vmul.f32 -1.442695, %v714_v8  ;;  %v756_v16 = vadd.f32 %v755_v10, %v515_v12 }
 0x326   :  { %v716_v13 = vpop.f32.mrf.mxu1  ;;  %v757_v14 = vpop.f32.mrf.mxu0 }
 0x327   :  { %1186 = vpow2.f32 %v964_v11  ;;  %v965_v18 = vmul.f32 -1.442695, %v756_v16 }
 0x328   :  { %v717_v1 = vpop.f32.mrf.mxu1  ;;  %v758_v15 = vpop.f32.mrf.mxu0 }
 0x329   :  { %1188 = vpow2.f32 %v965_v18 }
 0x32a   :  { %1190 = vtanh.f32 %v754_v19 }
 0x334   :  { %v1187_v20 = vpop.eup %1186 }
 0x335   :  { %v763_v21 = vadd.f32 1.0, %v1187_v20 }
 0x336   :  { %v1189_v22 = vpop.eup %1188 }
 0x337   :  { %1192 = vrcp.f32 %v763_v21  ;;  %v770_v23 = vadd.f32 1.0, %v1189_v22  ;;  %v1191_v24 = vpop.eup %1190 }
 0x339   :  { %1194 = vrcp.f32 %v770_v23 }
 0x344   :  { %v1193_v25 = vpop.eup %1192 }
 0x345   :  { %v773_v26 = vmul.f32 %v1193_v25, %v1191_v24 }
 0x346   :  { %v1195_v27 = vpop.eup %1194 }
 0x347   :  { %1196 = vtanh.f32 %v773_v26 }
 0x354   :  { %v1197_v28 = vpop.eup %1196 }
 0x355   :  { %v775_v29 = vmul.f32 %v1197_v28, %v1195_v27 }
 0x357   :  { %v776_v30 = vpack.c.bf16 %v775_v29, %v775_v29 }
 0x359   :  { %1053 = vmatmul.mubr.bf16.vlgmr.msra.gmra.mxu1 %v776_v30 }
 0x419   :  { %v882_v32 = vpop.f32.mrf.mxu1 }
 0x41a   :  { %v883_v33 = vadd.f32 %v966_v31, %v882_v32 }
 0x41b   :  { %v1054_v34 = vpop.f32.mrf.mxu1 }
 0x41c   :  { %888 = vst [vmem:[%s1388_s6] sm:$0xff] %v883_v33 }
 0x41d   :  { %v885_v36 = vpop.f32.mrf.mxu1 }
 0x41f   :  { %v1055_v37 = vpop.f32.mrf.mxu1 }
 0x420   :  { %893 = vsyncpa [#allocation3], 1 }
 0x421   :  { %894 = vsyncpa [#allocation5], 1 }

</bundles_post_ra>
